<compile_context>
chip_gen: v7x
topology: tpu7x:2x2x1
jax: 0.10.0
libtpu: 0.0.40
codegen_flags: <defaults>
</compile_context>

<pallas_src>
import functools

import jax
import jax.numpy as jnp
from jax.experimental import pallas as pl
from jax.experimental.pallas import tpu as pltpu

# ---------------- specs (small, consistent with the module) ----------------
N_NODES = 16          # number of nodes
N_EDGES = 32          # number of edges
NODE_IN_FTS = 32      # specs.node_in_fts
EDGE_IN_FTS = 16      # specs.edge_in_fts
NODE_OUT_FTS = 32     # specs.node_out_fts
EDGE_OUT_FTS = 16     # specs.edge_out_fts
NR_OF_HOPS = 2        # specs.nr_of_hops
RESIDUAL_MODE = "gated"   # specs.residual_mode
UPDATE_EDGE_FIRST = True  # specs.update_edge_first
# head_agg_mode / node_agg_mode != 'concat'  =>  node_in_w_head == NODE_OUT_FTS
# NODE_IN_FTS == NODE_OUT_FTS so the (deep-copied) hop weights fit every hop.

_PARAM_ORDER = ("W_e_src", "W_e_dst", "W_e_e", "b_edge",
                "W_m_h", "W_m_e", "b_msg",
                "W_n_h", "W_n_a", "b_node",
                "W_prior", "W_curr")
_SLAB_LANES = 128     # lane-dense parameter slab


# ---------------- fused Pallas kernel ----------------
def _gn_block_kernel(idx_ref, node_ref, edge_ref, slab_ref,
                     node_out_ref, edge_out_ref,
                     *, layout, nr_of_hops, update_edge_first, residual_mode):
    f32 = jnp.float32
    E = idx_ref.shape[0]
    N = node_ref.shape[0]

    dot = functools.partial(jnp.dot, preferred_element_type=f32)

    def take(name):
        r0, rows, cols = layout[name]          # static python ints
        return slab_ref[r0:r0 + rows, 0:cols]  # static slice of the slab

    # ---- carve packed parameters (one DMA for all of them) ----
    w_es, w_ed, w_ee, b_e = take("W_e_src"), take("W_e_dst"), take("W_e_e"), take("b_edge")
    w_mh, w_me, b_m = take("W_m_h"), take("W_m_e"), take("b_msg")
    w_nh, w_na, b_n = take("W_n_h"), take("W_n_a"), take("b_node")
    w_p, w_c = take("W_prior"), take("W_curr")

    # ---- one-hot gather matrices from the packed [E, 2] index array ----
    src_col = idx_ref[:, 0:1]                                # [E, 1] int32
    dst_col = idx_ref[:, 1:2]                                # [E, 1] int32
    col_ids = jax.lax.broadcasted_iota(jnp.int32, (E, N), 1)
    g_src = (col_ids == src_col).astype(f32)                 # [E, N] gather by src
    g_dst = (col_ids == dst_col).astype(f32)                 # [E, N] gather by dst
    # scatter-add over dst == contraction of g_dst over E (no [N, E] one-hot).
    dn_scatter = (((0,), (0,)), ((), ()))

    h0 = node_ref[...].astype(f32)                           # [N, F_in]
    e0 = edge_ref[...].astype(f32)                           # [E, Fe_in]

    # ---- EdgeUpdate (specs.update_edge_first) ----
    # TODO(synk): EdgeUpdate internals not defined in the given source; a
    # linear+relu over [h_src, h_dst, edge_fts] (split weights) is used.
    if update_edge_first:
        # project-then-gather (N < E): gather rows of the projected features.
        e_upd = jnp.maximum(
            dot(g_src, dot(h0, w_es)) + dot(g_dst, dot(h0, w_ed))
            + dot(e0, w_ee) + b_e, 0.0)
    else:
        e_upd = e0

    # ---- hop loop (static unroll; same weights every hop — deepcopy of model) ----
    # TODO(synk): hop `model` body not defined in the given source; a
    # message-passing hop (relu message, sum aggregation, tanh update) is used.
    h = h0
    prior = None
    for _ in range(nr_of_hops):
        msg = jnp.maximum(dot(g_src, dot(h, w_mh)) + dot(e_upd, w_me) + b_m, 0.0)
        agg = jax.lax.dot_general(g_dst, msg, dimension_numbers=dn_scatter,
                                  preferred_element_type=f32)  # [N, F_out]
        curr = jnp.tanh(dot(h, w_nh) + dot(agg, w_na) + b_n)

        if prior is None:
            h = curr
        elif residual_mode == "gated":
            gate = jax.nn.sigmoid(dot(prior, w_p) + dot(curr, w_c))
            h = gate * curr + (1.0 - gate) * prior
        elif residual_mode == "add":
            h = curr + prior
        else:
            # TODO(synk): 'concat' residual changes feature width per hop; not
            # supported in the fused fixed-shape kernel.
            h = curr
        prior = h                                            # prior = post-residual h

    node_out_ref[...] = h.astype(node_out_ref.dtype)
    edge_out_ref[...] = e_upd.astype(edge_out_ref.dtype)


# ---------------- parameter packing (one lane-dense f32 slab) ----------------
def pack_params(params):
    blocks, layout, r = [], {}, 0
    for name in _PARAM_ORDER:
        w = jnp.asarray(params[name], jnp.float32)
        nr, nc = w.shape
        layout[name] = (r, nr, nc)
        padded_r = -(-nr // 8) * 8                 # sublane-align each entry
        blk = jnp.zeros((padded_r, _SLAB_LANES), jnp.float32).at[:nr, :nc].set(w)
        blocks.append(blk)
        r += padded_r
    return jnp.concatenate(blocks, axis=0), layout


# ---------------- GNBlock forward (single pallas_call, 4 operands) ----------------
def gn_block_forward(param_slab, node_fts, edge_fts, edges, *, layout):
    E = edges.shape[1]
    idx = edges.astype(jnp.int32).T                # [E, 2]: col 0 = src, col 1 = dst

    vmem = pl.BlockSpec(memory_space=pltpu.MemorySpace.VMEM)
    kernel = functools.partial(
        _gn_block_kernel,
        layout=layout,
        nr_of_hops=NR_OF_HOPS,
        update_edge_first=UPDATE_EDGE_FIRST,
        residual_mode=RESIDUAL_MODE,
    )
    node_out, edge_out = pl.pallas_call(
        kernel,
        out_shape=(
            jax.ShapeDtypeStruct((node_fts.shape[0], NODE_OUT_FTS), jnp.float32),
            jax.ShapeDtypeStruct((E, EDGE_OUT_FTS), jnp.float32),
        ),
        in_specs=[vmem, vmem, vmem, vmem],
        out_specs=(vmem, vmem),
    )(idx, node_fts, edge_fts, param_slab)

    return (None, None, node_out, edge_out, edges)


# ---------------- pure-JAX reference (for correctness check) ----------------
def gn_block_reference(params, node_fts, edge_fts, edges):
    hp = jax.lax.Precision.HIGHEST
    src, dst = edges[0], edges[1]
    h = node_fts
    if UPDATE_EDGE_FIRST:
        e = (jnp.dot(h[src], params["W_e_src"], precision=hp)
             + jnp.dot(h[dst], params["W_e_dst"], precision=hp)
             + jnp.dot(edge_fts, params["W_e_e"], precision=hp)
             + params["b_edge"])
        edge_fts = jnp.maximum(e, 0.0)
    prior = None
    for _ in range(NR_OF_HOPS):
        msg = jnp.maximum(jnp.dot(h[src], params["W_m_h"], precision=hp)
                          + jnp.dot(edge_fts, params["W_m_e"], precision=hp)
                          + params["b_msg"], 0.0)
        agg = jax.ops.segment_sum(msg, dst, num_segments=N_NODES)
        curr = jnp.tanh(jnp.dot(h, params["W_n_h"], precision=hp)
                        + jnp.dot(agg, params["W_n_a"], precision=hp)
                        + params["b_node"])
        if prior is None:
            h = curr
        elif RESIDUAL_MODE == "gated":
            gate = jax.nn.sigmoid(jnp.dot(prior, params["W_prior"], precision=hp)
                                  + jnp.dot(curr, params["W_curr"], precision=hp))
            h = gate * curr + (1.0 - gate) * prior
        else:
            h = curr + prior
        prior = h
    return h, edge_fts


# ---------------- parameter init (deterministic, synthetic, split weights) ----------------
def init_params(key):
    ks = jax.random.split(key, 12)

    def mk(k, shape, scale=0.1):
        return scale * jax.random.normal(k, shape, dtype=jnp.float32)

    return {
        # EdgeUpdate: [h_src | h_dst | e] @ W  ==  h_src@W_e_src + h_dst@W_e_dst + e@W_e_e
        "W_e_src": mk(ks[0], (NODE_IN_FTS, EDGE_OUT_FTS)),
        "W_e_dst": mk(ks[1], (NODE_IN_FTS, EDGE_OUT_FTS)),
        "W_e_e":   mk(ks[2], (EDGE_IN_FTS, EDGE_OUT_FTS)),
        "b_edge":  mk(ks[3], (1, EDGE_OUT_FTS)),
        # message: [h_src | e_upd] -> node_out_fts  (split)
        "W_m_h":   mk(ks[4], (NODE_IN_FTS, NODE_OUT_FTS)),
        "W_m_e":   mk(ks[5], (EDGE_OUT_FTS, NODE_OUT_FTS)),
        "b_msg":   mk(ks[6], (1, NODE_OUT_FTS)),
        # node update: [h | agg] -> node_out_fts  (split)
        "W_n_h":   mk(ks[7], (NODE_IN_FTS, NODE_OUT_FTS)),
        "W_n_a":   mk(ks[8], (NODE_OUT_FTS, NODE_OUT_FTS)),
        "b_node":  mk(ks[9], (1, NODE_OUT_FTS)),
        # gated residual parameters (torch.Tensor(node_out_fts, node_out_fts))
        "W_prior": mk(ks[10], (NODE_OUT_FTS, NODE_OUT_FTS)),
        "W_curr":  mk(ks[11], (NODE_OUT_FTS, NODE_OUT_FTS)),
    }


# ---------------- main ----------------
if __name__ == "__main__":
    key = jax.random.PRNGKey(0)
    k_param, k_node, k_edge, k_src, k_dst = jax.random.split(key, 5)

    params = init_params(k_param)
    param_slab, layout = pack_params(params)     # packed once at init time

    node_fts = jax.random.normal(k_node, (N_NODES, NODE_IN_FTS), dtype=jnp.float32)
    edge_fts = jax.random.normal(k_edge, (N_EDGES, EDGE_IN_FTS), dtype=jnp.float32)
    src = jax.random.randint(k_src, (N_EDGES,), 0, N_NODES, dtype=jnp.int32)
    dst = jax.random.randint(k_dst, (N_EDGES,), 0, N_NODES, dtype=jnp.int32)
    edges = jnp.stack([src, dst], axis=0)

    fwd = jax.jit(functools.partial(gn_block_forward, layout=layout))
    _, _, out_nodes, out_edges, out_edge_idx = fwd(param_slab, node_fts, edge_fts, edges)

    jax.block_until_ready(out_nodes)
    jax.block_until_ready(out_edges)

    # correctness check against a pure-JAX reference
    ref_nodes, ref_edges = gn_block_reference(params, node_fts, edge_fts, edges)

    assert out_nodes.shape == (N_NODES, NODE_OUT_FTS)
    assert out_edges.shape == (N_EDGES, EDGE_OUT_FTS)
    assert bool(jnp.all(jnp.isfinite(out_nodes)))
    assert bool(jnp.allclose(out_nodes, ref_nodes, atol=2e-3, rtol=2e-3))
    assert bool(jnp.allclose(out_edges, ref_edges, atol=2e-3, rtol=2e-3))
    print("KERNEL_OK")
</pallas_src>

<mosaic_0001>
module attributes {stable_mosaic.version = 11 : i64} {
  func.func @_gn_block_kernel(%arg0: memref<32x2xi32, #tpu.memory_space<vmem>>, %arg1: memref<16x32xf32, #tpu.memory_space<vmem>>, %arg2: memref<32x16xf32, #tpu.memory_space<vmem>>, %arg3: memref<280x128xf32, #tpu.memory_space<vmem>>, %arg4: memref<16x32xf32, #tpu.memory_space<vmem>>, %arg5: memref<32x16xf32, #tpu.memory_space<vmem>>) attributes {dimension_semantics = [], scalar_prefetch = 0 : i64, scratch_operands = 0 : i64, tpu.core_type = #tpu.core_type<tc>} {
    %c0 = arith.constant 0 : index
    %c0_0 = arith.constant 0 : index
    %0 = vector.load %arg3[%c0, %c0_0] : memref<280x128xf32, #tpu.memory_space<vmem>>, vector<32x16xf32>
    %c32 = arith.constant 32 : index
    %c0_1 = arith.constant 0 : index
    %1 = vector.load %arg3[%c32, %c0_1] : memref<280x128xf32, #tpu.memory_space<vmem>>, vector<32x16xf32>
    %c64 = arith.constant 64 : index
    %c0_2 = arith.constant 0 : index
    %2 = vector.load %arg3[%c64, %c0_2] : memref<280x128xf32, #tpu.memory_space<vmem>>, vector<16x16xf32>
    %c80 = arith.constant 80 : index
    %c0_3 = arith.constant 0 : index
    %3 = vector.load %arg3[%c80, %c0_3] : memref<280x128xf32, #tpu.memory_space<vmem>>, vector<1x16xf32>
    %c88 = arith.constant 88 : index
    %c0_4 = arith.constant 0 : index
    %4 = vector.load %arg3[%c88, %c0_4] : memref<280x128xf32, #tpu.memory_space<vmem>>, vector<32x32xf32>
    %c120 = arith.constant 120 : index
    %c0_5 = arith.constant 0 : index
    %5 = vector.load %arg3[%c120, %c0_5] : memref<280x128xf32, #tpu.memory_space<vmem>>, vector<16x32xf32>
    %c136 = arith.constant 136 : index
    %c0_6 = arith.constant 0 : index
    %6 = vector.load %arg3[%c136, %c0_6] : memref<280x128xf32, #tpu.memory_space<vmem>>, vector<1x32xf32>
    %c144 = arith.constant 144 : index
    %c0_7 = arith.constant 0 : index
    %7 = vector.load %arg3[%c144, %c0_7] : memref<280x128xf32, #tpu.memory_space<vmem>>, vector<32x32xf32>
    %c176 = arith.constant 176 : index
    %c0_8 = arith.constant 0 : index
    %8 = vector.load %arg3[%c176, %c0_8] : memref<280x128xf32, #tpu.memory_space<vmem>>, vector<32x32xf32>
    %c208 = arith.constant 208 : index
    %c0_9 = arith.constant 0 : index
    %9 = vector.load %arg3[%c208, %c0_9] : memref<280x128xf32, #tpu.memory_space<vmem>>, vector<1x32xf32>
    %c216 = arith.constant 216 : index
    %c0_10 = arith.constant 0 : index
    %10 = vector.load %arg3[%c216, %c0_10] : memref<280x128xf32, #tpu.memory_space<vmem>>, vector<32x32xf32>
    %c248 = arith.constant 248 : index
    %c0_11 = arith.constant 0 : index
    %11 = vector.load %arg3[%c248, %c0_11] : memref<280x128xf32, #tpu.memory_space<vmem>>, vector<32x32xf32>
    %c0_12 = arith.constant 0 : index
    %c0_13 = arith.constant 0 : index
    %12 = vector.load %arg0[%c0_12, %c0_13] : memref<32x2xi32, #tpu.memory_space<vmem>>, vector<32x1xi32>
    %c0_14 = arith.constant 0 : index
    %c1 = arith.constant 1 : index
    %13 = vector.load %arg0[%c0_14, %c1] : memref<32x2xi32, #tpu.memory_space<vmem>>, vector<32x1xi32>
    %14 = tpu.iota {dimensions = array<i32: 1>} : vector<32x16xi32>
    %15 = vector.broadcast %12 : vector<32x1xi32> to vector<32x16xi32>
    %16 = arith.cmpi eq, %14, %15 : vector<32x16xi32>
    %17 = arith.extui %16 : vector<32x16xi1> to vector<32x16xi32>
    %18 = arith.sitofp %17 : vector<32x16xi32> to vector<32x16xf32>
    %19 = vector.broadcast %13 : vector<32x1xi32> to vector<32x16xi32>
    %20 = arith.cmpi eq, %14, %19 : vector<32x16xi32>
    %21 = arith.extui %20 : vector<32x16xi1> to vector<32x16xi32>
    %22 = arith.sitofp %21 : vector<32x16xi32> to vector<32x16xf32>
    %c0_15 = arith.constant 0 : index
    %c0_16 = arith.constant 0 : index
    %23 = vector.load %arg1[%c0_15, %c0_16] : memref<16x32xf32, #tpu.memory_space<vmem>>, vector<16x32xf32>
    %c0_17 = arith.constant 0 : index
    %c0_18 = arith.constant 0 : index
    %24 = vector.load %arg2[%c0_17, %c0_18] : memref<32x16xf32, #tpu.memory_space<vmem>>, vector<32x16xf32>
    %cst = arith.constant dense<0.000000e+00> : vector<16x16xf32>
    %25 = tpu.matmul %23, %0, %cst {dimension_numbers = #tpu.dot_dimension_numbers<[1], [0], [0], [1], [0, 0, 1, 1], [], []>} : vector<16x32xf32>, vector<32x16xf32>, vector<16x16xf32> -> vector<16x16xf32>
    %cst_19 = arith.constant dense<0.000000e+00> : vector<32x16xf32>
    %26 = tpu.matmul %18, %25, %cst_19 {dimension_numbers = #tpu.dot_dimension_numbers<[1], [0], [0], [1], [0, 0, 1, 1], [], []>} : vector<32x16xf32>, vector<16x16xf32>, vector<32x16xf32> -> vector<32x16xf32>
    %cst_20 = arith.constant dense<0.000000e+00> : vector<16x16xf32>
    %27 = tpu.matmul %23, %1, %cst_20 {dimension_numbers = #tpu.dot_dimension_numbers<[1], [0], [0], [1], [0, 0, 1, 1], [], []>} : vector<16x32xf32>, vector<32x16xf32>, vector<16x16xf32> -> vector<16x16xf32>
    %cst_21 = arith.constant dense<0.000000e+00> : vector<32x16xf32>
    %28 = tpu.matmul %22, %27, %cst_21 {dimension_numbers = #tpu.dot_dimension_numbers<[1], [0], [0], [1], [0, 0, 1, 1], [], []>} : vector<32x16xf32>, vector<16x16xf32>, vector<32x16xf32> -> vector<32x16xf32>
    %29 = arith.addf %26, %28 : vector<32x16xf32>
    %cst_22 = arith.constant dense<0.000000e+00> : vector<32x16xf32>
    %30 = tpu.matmul %24, %2, %cst_22 {dimension_numbers = #tpu.dot_dimension_numbers<[1], [0], [0], [1], [0, 0, 1, 1], [], []>} : vector<32x16xf32>, vector<16x16xf32>, vector<32x16xf32> -> vector<32x16xf32>
    %31 = arith.addf %29, %30 : vector<32x16xf32>
    %32 = vector.broadcast %3 : vector<1x16xf32> to vector<32x16xf32>
    %33 = arith.addf %31, %32 : vector<32x16xf32>
    %cst_23 = arith.constant 0.000000e+00 : f32
    %34 = vector.broadcast %cst_23 : f32 to vector<32x16xf32>
    %35 = arith.maximumf %33, %34 : vector<32x16xf32>
    %cst_24 = arith.constant dense<0.000000e+00> : vector<16x32xf32>
    %36 = tpu.matmul %23, %4, %cst_24 {dimension_numbers = #tpu.dot_dimension_numbers<[1], [0], [0], [1], [0, 0, 1, 1], [], []>} : vector<16x32xf32>, vector<32x32xf32>, vector<16x32xf32> -> vector<16x32xf32>
    %cst_25 = arith.constant dense<0.000000e+00> : vector<32x32xf32>
    %37 = tpu.matmul %18, %36, %cst_25 {dimension_numbers = #tpu.dot_dimension_numbers<[1], [0], [0], [1], [0, 0, 1, 1], [], []>} : vector<32x16xf32>, vector<16x32xf32>, vector<32x32xf32> -> vector<32x32xf32>
    %cst_26 = arith.constant dense<0.000000e+00> : vector<32x32xf32>
    %38 = tpu.matmul %35, %5, %cst_26 {dimension_numbers = #tpu.dot_dimension_numbers<[1], [0], [0], [1], [0, 0, 1, 1], [], []>} : vector<32x16xf32>, vector<16x32xf32>, vector<32x32xf32> -> vector<32x32xf32>
    %39 = arith.addf %37, %38 : vector<32x32xf32>
    %40 = vector.broadcast %6 : vector<1x32xf32> to vector<32x32xf32>
    %41 = arith.addf %39, %40 : vector<32x32xf32>
    %cst_27 = arith.constant 0.000000e+00 : f32
    %42 = vector.broadcast %cst_27 : f32 to vector<32x32xf32>
    %43 = arith.maximumf %41, %42 : vector<32x32xf32>
    %cst_28 = arith.constant dense<0.000000e+00> : vector<16x32xf32>
    %44 = tpu.matmul %22, %43, %cst_28 {dimension_numbers = #tpu.dot_dimension_numbers<[0], [0], [1], [1], [0, 1, 1, 1], [], []>} : vector<32x16xf32>, vector<32x32xf32>, vector<16x32xf32> -> vector<16x32xf32>
    %cst_29 = arith.constant dense<0.000000e+00> : vector<16x32xf32>
    %45 = tpu.matmul %23, %7, %cst_29 {dimension_numbers = #tpu.dot_dimension_numbers<[1], [0], [0], [1], [0, 0, 1, 1], [], []>} : vector<16x32xf32>, vector<32x32xf32>, vector<16x32xf32> -> vector<16x32xf32>
    %cst_30 = arith.constant dense<0.000000e+00> : vector<16x32xf32>
    %46 = tpu.matmul %44, %8, %cst_30 {dimension_numbers = #tpu.dot_dimension_numbers<[1], [0], [0], [1], [0, 0, 1, 1], [], []>} : vector<16x32xf32>, vector<32x32xf32>, vector<16x32xf32> -> vector<16x32xf32>
    %47 = arith.addf %45, %46 : vector<16x32xf32>
    %48 = vector.broadcast %9 : vector<1x32xf32> to vector<16x32xf32>
    %49 = arith.addf %47, %48 : vector<16x32xf32>
    %50 = math.tanh %49 : vector<16x32xf32>
    %cst_31 = arith.constant dense<0.000000e+00> : vector<16x32xf32>
    %51 = tpu.matmul %50, %4, %cst_31 {dimension_numbers = #tpu.dot_dimension_numbers<[1], [0], [0], [1], [0, 0, 1, 1], [], []>} : vector<16x32xf32>, vector<32x32xf32>, vector<16x32xf32> -> vector<16x32xf32>
    %cst_32 = arith.constant dense<0.000000e+00> : vector<32x32xf32>
    %52 = tpu.matmul %18, %51, %cst_32 {dimension_numbers = #tpu.dot_dimension_numbers<[1], [0], [0], [1], [0, 0, 1, 1], [], []>} : vector<32x16xf32>, vector<16x32xf32>, vector<32x32xf32> -> vector<32x32xf32>
    %cst_33 = arith.constant dense<0.000000e+00> : vector<32x32xf32>
    %53 = tpu.matmul %35, %5, %cst_33 {dimension_numbers = #tpu.dot_dimension_numbers<[1], [0], [0], [1], [0, 0, 1, 1], [], []>} : vector<32x16xf32>, vector<16x32xf32>, vector<32x32xf32> -> vector<32x32xf32>
    %54 = arith.addf %52, %53 : vector<32x32xf32>
    %55 = vector.broadcast %6 : vector<1x32xf32> to vector<32x32xf32>
    %56 = arith.addf %54, %55 : vector<32x32xf32>
    %cst_34 = arith.constant 0.000000e+00 : f32
    %57 = vector.broadcast %cst_34 : f32 to vector<32x32xf32>
    %58 = arith.maximumf %56, %57 : vector<32x32xf32>
    %cst_35 = arith.constant dense<0.000000e+00> : vector<16x32xf32>
    %59 = tpu.matmul %22, %58, %cst_35 {dimension_numbers = #tpu.dot_dimension_numbers<[0], [0], [1], [1], [0, 1, 1, 1], [], []>} : vector<32x16xf32>, vector<32x32xf32>, vector<16x32xf32> -> vector<16x32xf32>
    %cst_36 = arith.constant dense<0.000000e+00> : vector<16x32xf32>
    %60 = tpu.matmul %50, %7, %cst_36 {dimension_numbers = #tpu.dot_dimension_numbers<[1], [0], [0], [1], [0, 0, 1, 1], [], []>} : vector<16x32xf32>, vector<32x32xf32>, vector<16x32xf32> -> vector<16x32xf32>
    %cst_37 = arith.constant dense<0.000000e+00> : vector<16x32xf32>
    %61 = tpu.matmul %59, %8, %cst_37 {dimension_numbers = #tpu.dot_dimension_numbers<[1], [0], [0], [1], [0, 0, 1, 1], [], []>} : vector<16x32xf32>, vector<32x32xf32>, vector<16x32xf32> -> vector<16x32xf32>
    %62 = arith.addf %60, %61 : vector<16x32xf32>
    %63 = vector.broadcast %9 : vector<1x32xf32> to vector<16x32xf32>
    %64 = arith.addf %62, %63 : vector<16x32xf32>
    %65 = math.tanh %64 : vector<16x32xf32>
    %cst_38 = arith.constant dense<0.000000e+00> : vector<16x32xf32>
    %66 = tpu.matmul %50, %10, %cst_38 {dimension_numbers = #tpu.dot_dimension_numbers<[1], [0], [0], [1], [0, 0, 1, 1], [], []>} : vector<16x32xf32>, vector<32x32xf32>, vector<16x32xf32> -> vector<16x32xf32>
    %cst_39 = arith.constant dense<0.000000e+00> : vector<16x32xf32>
    %67 = tpu.matmul %65, %11, %cst_39 {dimension_numbers = #tpu.dot_dimension_numbers<[1], [0], [0], [1], [0, 0, 1, 1], [], []>} : vector<16x32xf32>, vector<32x32xf32>, vector<16x32xf32> -> vector<16x32xf32>
    %68 = arith.addf %66, %67 : vector<16x32xf32>
    %69 = arith.negf %68 : vector<16x32xf32>
    %70 = math.exp %69 : vector<16x32xf32>
    %cst_40 = arith.constant 1.000000e+00 : f32
    %71 = vector.broadcast %cst_40 : f32 to vector<16x32xf32>
    %72 = arith.addf %71, %70 : vector<16x32xf32>
    %73 = arith.divf %71, %72 : vector<16x32xf32>
    %74 = arith.mulf %73, %65 : vector<16x32xf32>
    %cst_41 = arith.constant 1.000000e+00 : f32
    %75 = vector.broadcast %cst_41 : f32 to vector<16x32xf32>
    %76 = arith.subf %75, %73 : vector<16x32xf32>
    %77 = arith.mulf %76, %50 : vector<16x32xf32>
    %78 = arith.addf %74, %77 : vector<16x32xf32>
    %c0_42 = arith.constant 0 : index
    %c0_43 = arith.constant 0 : index
    %79 = vector.load %arg4[%c0_42, %c0_43] : memref<16x32xf32, #tpu.memory_space<vmem>>, vector<16x32xf32>
    tpu.vector_store %arg4[%c0_42, %c0_43], %78 {strides = array<i32>} : memref<16x32xf32, #tpu.memory_space<vmem>>, vector<16x32xf32>,
    %c0_44 = arith.constant 0 : index
    %c0_45 = arith.constant 0 : index
    %80 = vector.load %arg5[%c0_44, %c0_45] : memref<32x16xf32, #tpu.memory_space<vmem>>, vector<32x16xf32>
    tpu.vector_store %arg5[%c0_44, %c0_45], %35 {strides = array<i32>} : memref<32x16xf32, #tpu.memory_space<vmem>>, vector<32x16xf32>,
    return
  }
}

</mosaic_0001>

<bundles_post_ra>
// kernel: gn_block_forward.1
= control target key start
LH: loop header
LB: loop body
LE: loop exit
PB: predicated region body
PF: predicated region fallthrough
CT: control target
= control target key end

     0   :  { %11 = vsyncpa [#allocation3], 0  ;;  %s2602_s0 = inlined_call_operand.vmem [shape: s32[32,2], index: 0, kind: input, shape index: {}]   ;;  %s2603_s1 = inlined_call_operand.vmem [shape: f32[16,32], index: 1, kind: input, shape index: {}]   ;;  %s2604_s2 = inlined_call_operand.vmem [shape: f32[32,16], index: 2, kind: input, shape index: {}]   ;;  %s2605_s3 = inlined_call_operand.hbm [shape: f32[280,128], index: 3, kind: input, shape index: {}]   ;;  %s2606_s4 = inlined_call_operand.hbm [shape: f32[16,32], index: 4, kind: output, shape index: {0}]   ;;  %s2607_s5 = inlined_call_operand.vmem [shape: f32[32,16], index: 5, kind: output, shape index: {1}]  }
   0x1   :  { %12 = vsyncpa [#allocation4], 0  ;;  %s2323_s18 = smov [#allocation2]   ;;  %s2275_s22 = scalar_lea.hbm %s2605_s3, 4480 }
   0x2   :  { %s24_s19 = sshll.u32 %s2323_s18, 4  ;;  %p2276_p0 = scmp.ne.s32.totalorder %s2605_s3, %s2275_s22  ;;  %s25_s19 = int_to_ptr.vmem [resolvable:$true] %s24_s19 }
   0x3   :  { %p2279_p1 = scmp.lt.u32.totalorder %s2275_s22, %s2605_s3 }
   0x5   :  { %p2281_p2 = pnand %p2279_p1, %p2276_p0 }
   0x7   :  { %2284 = shalt.err (!%p2281_p2)
}
   0x8   :  { %s2285_s27 = scalar_lea.vmem %s25_s19, 4480  ;;  %p2290_p4 = scmp.lt.s32.totalorder %s25_s19, %s25_s19 }
   0x9   :  { %p2286_p3 = scmp.ne.s32.totalorder %s25_s19, %s2285_s27  ;;  %p2291_p5 = scmp.lt.s32.totalorder %s2285_s27, %s2285_s27 }
   0xb   :  { %p2292_p6 = por %p2291_p5, %p2290_p4 }
   0xd   :  { %p2293_p7 = pnand %p2292_p6, %p2286_p3 }
   0xf   :  { %2296 = shalt.err (!%p2293_p7)
}
  0x10   :  { %s2324_s28 = smov 128   ;;  %s2325_s29 = smov 8  }
  0x11   :  { %30 = dma.hbm_to_vmem [thread:$0]  %s2605_s3, 4480, %s25_s19, [#allocation3], %s2324_s28, %s2324_s28, %s2325_s29  }
  0x12   :  { %2319 = dma.done.wait [#allocation3], 4480  }
  0x13   :  { %2320 = vsyncadd [#allocation3], 4294962816  ;;  %v2326_v0 = vmov 1   ;;  %v38_v1 = vld [vmem:[#allocation2 + $0x20] sm:$0xff]  ;;  %v39_v2 = vld [vmem:[#allocation2 + $0x28] sm:$0xff]  ;;  %vm129_vm0 = vcmask 261120   ;;  %v73_v26 = vlaneseq }
  0x14   :  { %2254 = vset.pattern.permute.xlu0 %v2326_v0  ;;  %2255 = vset.pattern.permute.xlu1 %v2326_v0  ;;  %v34_v3 = vld [vmem:[#allocation2] sm:$0xff]  ;;  %v2121_v4 = vpack.c.bf16 %v39_v2, %v38_v1  ;;  %v35_v5 = vld [vmem:[#allocation2 + $0x8] sm:$0xff]  ;;  %v40_v6 = vld [vmem:[#allocation2 + $0x30] sm:$0xff]  ;;  %v2327_v19 = vmov 0   ;;  %vm286_vm1 = vcmask 130048   ;;  %v2328_v30 = vmov 0.0  }
  0x15   :  { %v41_v7 = vld [vmem:[#allocation2 + $0x38] sm:$0xff]  ;;  %v2113_v8 = vpack.c.bf16 %v35_v5, %v34_v3  ;;  %v36_v10 = vld [vmem:[#allocation2 + $0x10] sm:$0xff]  ;;  %v2378_v12 = vld [vmem:[%s2603_s1] sm:$0xff]  ;;  %v74_v27 = vand.u32 127, %v73_v26 }
  0x16   :  { %v2125_v9 = vpack.c.bf16 %v41_v7, %v40_v6  ;;  %v37_v11 = vld [vmem:[#allocation2 + $0x18] sm:$0xff]  ;;  %2122 = vmatprep.subr.bf16.mxu1 %v2121_v4  ;;  %1940 = vmatprep.mubr.msk.f32.mxu1 %vm129_vm0, %v2378_v12  ;;  %v69_v14 = vld [vmem:[%s2602_s0] sm:$0xff]  ;;  %v71_v15 = vld [vmem:[%s2602_s0 + $0x10] sm:$0xff] }
  0x17   :  { %v2117_v13 = vpack.c.bf16 %v37_v11, %v36_v10  ;;  %2124 = vmatpush3.bf16.msra.mxu1 %v2121_v4  ;;  %2114 = vmatprep.subr.bf16.mxu0 %v2113_v8  ;;  %v2393_v16 = vld [vmem:[%s2603_s1 + $0x8] sm:$0xff]  ;;  %v72_v18 = vld [vmem:[%s2602_s0 + $0x18] sm:$0xff]  ;;  %v46_v21 = vld [vmem:[#allocation2 + $0x60] sm:$0xff] }
  0x18   :  { %2116 = vmatpush3.bf16.msra.mxu0 %v2113_v8  ;;  %2126 = vmatprep.subr.bf16.mxu1 %v2125_v9  ;;  %v70_v17 = vld [vmem:[%s2602_s0 + $0x8] sm:$0xff]  ;;  %v45_v20 = vld [vmem:[#allocation2 + $0x58] sm:$0xff]  ;;  %v48_v24 = vld [vmem:[#allocation2 + $0x70] sm:$0xff] }
  0x19   :  { %2118 = vmatprep.subr.bf16.mxu0 %v2117_v13  ;;  %1929 = vmatprep.mubr.msk.f32.mxu0 %vm129_vm0, %v2378_v12  ;;  %v2407_v22 = vpack.c.bf16 %v46_v21, %v45_v20  ;;  %v47_v23 = vld [vmem:[#allocation2 + $0x68] sm:$0xff]  ;;  %v42_v51 = vld [vmem:[#allocation2 + $0x40] sm:$0xff]  ;;  %v127_v56 = vld [vmem:[%s2604_s2 + $0x10] sm:$0xff] }
  0x1a   :  { %100 = vperm.xlu0 %2254, %v69_v14   ;;  %106 = vperm.xlu1 %2255, %v71_v15   ;;  %v2411_v25 = vpack.c.bf16 %v48_v24, %v47_v23  ;;  %v43_v52 = vld [vmem:[#allocation2 + $0x48] sm:$0xff]  ;;  %v125_v54 = vld [vmem:[%s2604_s2] sm:$0xff]  ;;  %v128_v57 = vld [vmem:[%s2604_s2 + $0x18] sm:$0xff] }
  0x1b   :  { %2128 = vmatpush3.bf16.msra.mxu1 %v2125_v9  ;;  %v2137_v53 = vpack.c.bf16 %v43_v52, %v42_v51  ;;  %v126_v55 = vld [vmem:[%s2604_s2 + $0x8] sm:$0xff]  ;;  %v49_v58 = vld [vmem:[#allocation2 + $0x78] sm:$0xff]  ;;  %v50_v59 = vld [vmem:[#allocation2 + $0x80] sm:$0xff] }
  0x1c   :  { %2120 = vmatpush3.bf16.msra.mxu0 %v2117_v13  ;;  %2142 = vmatprep.subr.bf16.mxu1 %v2407_v22  ;;  %v2149_v60 = vpack.c.bf16 %v50_v59, %v49_v58  ;;  %v59_v20 = vld [vmem:[#allocation2 + $0xc8] sm:$0xff]  ;;  %v52_v52 = vld [vmem:[#allocation2 + $0x90] sm:$0xff] }
  0x1e   :  { %1941 = vmatmul.mubr.msk.f32.vlgmr.msra.gmra.mrb[0].mxu1 %vm129_vm0, %v2393_v16  ;;  %103 = vperm.xlu0 %2254, %v70_v17  }
  0x1f   :  { %1930 = vmatmul.mubr.msk.f32.vlgmr.msra.gmra.mrb[0].mxu0 %vm129_vm0, %v2393_v16  ;;  %109 = vperm.xlu1 %2255, %v72_v18  }
  0x20   :  { %1981 = vmatprep.mubr.msk.f32.mxu1 %vm129_vm0, %v2378_v12  ;;  %2144 = vmatpush3.bf16.msra.mxu1 %v2407_v22 }
  0x21   :  { %2146 = vmatprep.subr.bf16.mxu1 %v2411_v25 }
  0x22   :  { %2256 = vset.pattern.permute.xlu0 %v2327_v19 }
  0x23   :  { %2257 = vset.pattern.permute.xlu1 %v2327_v19  ;;  %76 = vperm.xlu0 %2256, %v69_v14  }
  0x24   :  { %79 = vperm.xlu1 %2257, %v70_v17   ;;  %2148 = vmatpush3.bf16.msra.mxu1 %v2411_v25  ;;  %v57_v17 = vld [vmem:[#allocation2 + $0xb8] sm:$0xff] }
  0x25   :  { %2150 = vmatprep.subr.bf16.mxu1 %v2149_v60 }
  0x27   :  { %85 = vperm.xlu0 %2256, %v72_v18   ;;  %1982 = vmatmul.mubr.msk.f32.vlgmr.msra.gmra.mrb[2].mxu1 %vm129_vm0, %v2393_v16  ;;  %v58_v18 = vld [vmem:[#allocation2 + $0xc0] sm:$0xff] }
  0x28   :  { %82 = vperm.xlu1 %2257, %v71_v15   ;;  %2152 = vmatpush3.bf16.msra.mxu1 %v2149_v60  ;;  %v56_v15 = vld [vmem:[#allocation2 + $0xb0] sm:$0xff]  ;;  %v2484_v21 = vpack.c.bf16 %v59_v20, %v58_v18  ;;  %v65_v20 = vld [vmem:[#allocation2 + $0xf8] sm:$0xff] }
  0x29   :  { %v2482_v19 = vpack.c.bf16 %v57_v17, %v56_v15 }
  0x2b   :  { %2258 = vset.pattern.permute.xlu0 %v2326_v0  ;;  %v1776_v0 = vld [vmem:[#allocation2 + $0x50] ss:$0 sm:$0xff] }
  0x99   :  { %v101_v28 = vpop.permute.xlu0 %100  ;;  %v107_v29 = vpop.permute.xlu1 %106 }
  0x9a   :  { %vm111_vm2 = vcmp.eq.s32.totalorder %v74_v27, %v101_v28  ;;  %vm113_vm4 = vcmp.eq.s32.totalorder %v74_v27, %v107_v29  ;;  %v2498_v28 = vld [vmem:[#allocation2 + $0x88] ss:$0 sm:$0xff] }
  0x9b   :  { %v1756_v31 = vsel %vm111_vm2, 1.0, %v2328_v30  ;;  %v1758_v35 = vsel %vm113_vm4, 1.0, %v2328_v30 }
  0x9c   :  { %863 = vxpose.xlu1.b32.start [1/4] (short) (narrow) %v1756_v31, 16  ;;  %1947 = vmatprep.mubr.msk.f32.mxu0 %vm286_vm1, %v1756_v31 }
  0x9d   :  { %v104_v32 = vpop.permute.xlu0 %103 }
  0x9e   :  { %vm112_vm3 = vcmp.eq.s32.totalorder %v74_v27, %v104_v32  ;;  %v110_v33 = vpop.permute.xlu1 %109 }
  0x9f   :  { %v1757_v34 = vsel %vm112_vm3, 1.0, %v2328_v30  ;;  %vm114_vm5 = vcmp.eq.s32.totalorder %v74_v27, %v110_v33 }
  0xa0   :  { %864 = vxpose.xlu1.b32.cont [2/4] (short) (narrow) %v1757_v34, 16  ;;  %v1759_v39 = vsel %vm114_vm5, 1.0, %v2328_v30 }
  0xa2   :  { %v77_v36 = vpop.permute.xlu0 %76 }
  0xa3   :  { %v80_v37 = vpop.permute.xlu1 %79  ;;  %vm87_vm6 = vcmp.eq.s32.totalorder %v74_v27, %v77_v36 }
  0xa4   :  { %865 = vxpose.xlu1.b32.cont [3/4] (short) (narrow) %v1758_v35, 16  ;;  %vm88_vm7 = vcmp.eq.s32.totalorder %v74_v27, %v80_v37  ;;  %v2418_v38 = vsel %vm87_vm6, 1.0, %v2328_v30 }
  0xa5   :  { %v2420_v40 = vsel %vm88_vm7, 1.0, %v2328_v30 }
  0xa6   :  { %v86_v41 = vpop.permute.xlu0 %85 }
  0xa7   :  { %v83_v42 = vpop.permute.xlu1 %82  ;;  %vm90_vm8 = vcmp.eq.s32.totalorder %v74_v27, %v86_v41 }
  0xa8   :  { %866 = vxpose.xlu1.b32.end [4/4] (short) (narrow) %v1759_v39, 16  ;;  %vm89_vm9 = vcmp.eq.s32.totalorder %v74_v27, %v83_v42  ;;  %v2422_v43 = vsel %vm90_vm8, 1.0, %v2328_v30 }
  0xa9   :  { %v2424_v44 = vsel %vm89_vm9, 1.0, %v2328_v30 }
  0xf1   :  { %v1942_v45 = vpop.f32.mrb[0].mxu1 }
  0xf2   :  { %v277_v46 = vpop.f32.mrb[1].mxu1  ;;  %v1931_v47 = vpop.f32.mrb[0].mxu0 }
  0xf3   :  { %v2129_v48 = vpack.c.bf16 %v1942_v45, %v277_v46  ;;  %v202_v49 = vpop.f32.mrb[1].mxu0 }
  0xf4   :  { %v2133_v50 = vpack.c.bf16 %v1931_v47, %v202_v49 }
  0xf5   :  { %2130 = vmatprep.subr.bf16.mxu0 %v2129_v48 }
  0xf6   :  { %2132 = vmatpush3.bf16.msra.mxu0 %v2129_v48 }
  0xf7   :  { %2134 = vmatprep.subr.bf16.mxu0 %v2133_v50 }
  0xf9   :  { %1948 = vmatmul.mubr.msk.f32.vlgmr.msra.gmra.mrb[2].mxu0 %vm286_vm1, %v1757_v34 }
  0xfa   :  { %1950 = vmatprep.mubr.msk.f32.mxu0 %vm286_vm1, %v1758_v35  ;;  %2136 = vmatpush3.bf16.msra.mxu0 %v2133_v50  ;;  %v1983_v61 = vpop.f32.mrb[2].mxu1 }
  0xfb   :  { %2138 = vmatprep.subr.bf16.mxu0 %v2137_v53  ;;  %v660_v62 = vpop.f32.mrb[3].mxu1 }
  0xfc   :  { %v2153_v63 = vpack.c.bf16 %v1983_v61, %v660_v62 }
  0xfd   :  { %1951 = vmatmul.mubr.msk.f32.gmra.mrb[4].mxu0 %vm286_vm1, %v1759_v39 }
  0xfe   :  { %1957 = vmatprep.mubr.msk.f32.mxu0 %vm286_vm1, %v2418_v38  ;;  %2154 = vmatprep.subr.bf16.mxu1 %v2153_v63 }
 0x101   :  { %1958 = vmatmul.mubr.msk.f32.vlgmr.msra.gmra.mrb[2].mxu0 %vm286_vm1, %v2420_v40 }
 0x102   :  { %1960 = vmatprep.mubr.msk.f32.mxu0 %vm286_vm1, %v2424_v44  ;;  %2140 = vmatpush3.bf16.msra.mxu0 %v2137_v53  ;;  %v53_v53 = vld [vmem:[#allocation2 + $0x98] sm:$0xff] }
 0x105   :  { %1961 = vmatmul.mubr.msk.f32.gmra.mrb[4].mxu0 %vm286_vm1, %v2422_v43 }
 0x106   :  { %1967 = vmatprep.mubr.msk.f32.mxu0 %vm286_vm1, %v125_v54  ;;  %v2516_v54 = vpack.c.bf16 %v53_v53, %v52_v52 }
 0x109   :  { %1968 = vmatmul.mubr.msk.f32.vlgmr.msra.gmra.mrb[2].mxu0 %vm286_vm1, %v126_v55  ;;  %v54_v55 = vld [vmem:[#allocation2 + $0xa0] sm:$0xff] }
 0x10a   :  { %1970 = vmatprep.mubr.msk.f32.mxu0 %vm286_vm1, %v127_v56  ;;  %v55_v56 = vld [vmem:[#allocation2 + $0xa8] sm:$0xff] }
 0x10b   :  { %v2519_v59 = vpack.c.bf16 %v55_v56, %v54_v55 }
 0x10d   :  { %1971 = vmatmul.mubr.msk.f32.gmra.mrb[4].mxu0 %vm286_vm1, %v128_v57 }
 0x11c   :  { %v879_v14 = vpop.trf.xlu1 }
 0x11d   :  { %2012 = vmatprep.mubr.msk.f32.mxu0 %vm129_vm0, %v879_v14 }
 0x120   :  { %v2508_v51 = vpop.trf.xlu1 }
 0x1dc   :  { %v1969_v1 = vpop.f32.mrb[2].mxu0 }
 0x1dd   :  { %v587_v2 = vadd.f32 %v1969_v1, %v1776_v0  ;;  %v559_v3 = vpop.f32.mrb[3].mxu0 }
 0x1de   :  { %v586_v4 = vadd.f32 %v1776_v0, %v559_v3 }
 0x1df   :  { %v591_v5 = vmax.f32 %v587_v2, 0.0 }
 0x1e0   :  { %v590_v6 = vmax.f32 %v586_v4, 0.0  ;;  %v1972_v7 = vpop.f32.mrb[4].mxu0 }
 0x1e1   :  { %1728 = vst.msk [vmem:[%s2607_s5 + $0x8] sm:$0xff] %vm286_vm1, %v591_v5  ;;  %v589_v8 = vadd.f32 %v1972_v7, %v1776_v0  ;;  %v569_v9 = vpop.f32.mrb[5].mxu0 }
 0x1e2   :  { %1727 = vst.msk [vmem:[%s2607_s5] sm:$0xff] %vm286_vm1, %v590_v6  ;;  %v588_v10 = vadd.f32 %v1776_v0, %v569_v9  ;;  %1988 = vmatprep.mubr.msk.f32.mxu1 %vm286_vm1, %v590_v6 }
 0x1e3   :  { %v593_v11 = vmax.f32 %v589_v8, 0.0  ;;  %1989 = vmatmul.mubr.msk.f32.vlgmr.msra.gmra.mrb[4].mxu1 %vm286_vm1, %v591_v5 }
 0x1e4   :  { %v592_v13 = vmax.f32 %v588_v10, 0.0  ;;  %2156 = vmatpush3.bf16.msra.mxu1 %v2153_v63 }
 0x1e5   :  { %1730 = vst.msk [vmem:[%s2607_s5 + $0x18] sm:$0xff] %vm286_vm1, %v593_v11  ;;  %2166 = vmatprep.subr.bf16.mxu1 %v2482_v19 }
 0x1e6   :  { %1729 = vst.msk [vmem:[%s2607_s5 + $0x10] sm:$0xff] %vm286_vm1, %v592_v13  ;;  %1991 = vmatprep.mubr.msk.f32.mxu1 %vm286_vm1, %v592_v13  ;;  %s2329_s5 = smov [#allocation5]  }
 0x1e7   :  { %1992 = vmatmul.mubr.msk.f32.gmra.mrb[6].mxu1 %vm286_vm1, %v593_v11  ;;  %s1736_s8 = sshll.u32 %s2329_s5, 4  ;;  %s1737_s8 = int_to_ptr.vmem [resolvable:$true] %s1736_s8 }
 0x1e8   :  { %1998 = vmatprep.mubr.msk.f32.mxu1 %vm286_vm1, %v2418_v38  ;;  %s2297_s3 = scalar_lea.vmem %s1737_s8, 256  ;;  %p2302_p9 = scmp.lt.s32.totalorder %s1737_s8, %s1737_s8 }
 0x1e9   :  { %p2298_p8 = scmp.ne.s32.totalorder %s1737_s8, %s2297_s3  ;;  %p2303_p10 = scmp.lt.s32.totalorder %s2297_s3, %s2297_s3 }
 0x1eb   :  { %1999 = vmatmul.mubr.msk.f32.vlgmr.msra.gmra.mrb[8].mxu1 %vm286_vm1, %v2420_v40  ;;  %p2304_p11 = por %p2303_p10, %p2302_p9 }
 0x1ec   :  { %2001 = vmatprep.mubr.msk.f32.mxu1 %vm286_vm1, %v2424_v44  ;;  %2168 = vmatpush3.bf16.msra.mxu1 %v2482_v19 }
 0x1ed   :  { %2170 = vmatprep.subr.bf16.mxu1 %v2484_v21  ;;  %p2305_p12 = pnand %p2304_p11, %p2298_p8 }
 0x1ef   :  { %2002 = vmatmul.mubr.msk.f32.gmra.mrb[10].mxu1 %vm286_vm1, %v2422_v43 }
 0x1f0   :  { %2172 = vmatpush3.bf16.msra.mxu1 %v2484_v21 }
 0x1f1   :  { %2174 = vmatprep.subr.bf16.mxu1 %v2516_v54 }
 0x2b6   :  { %v2490_v23 = vpop.f32.mrb[4].mxu1 }
 0x2b7   :  { %v2492_v24 = vpop.f32.mrb[5].mxu1 }
 0x2ba   :  { %v2494_v26 = vpop.f32.mrb[6].mxu1 }
 0x2bb   :  { %v2496_v27 = vpop.f32.mrb[7].mxu1 }
 0x2be   :  { %v2000_v29 = vpop.f32.mrb[8].mxu1 }
 0x2bf   :  { %v838_v30 = vadd.f32 %v2000_v29, %v2490_v23  ;;  %v832_v31 = vpop.f32.mrb[9].mxu1  ;;  %v62_v29 = vld [vmem:[#allocation2 + $0xe0] sm:$0xff] }
 0x2c0   :  { %v833_v32 = vadd.f32 %v832_v31, %v2492_v24 }
 0x2c1   :  { %v856_v33 = vadd.f32 %v2498_v28, %v838_v30 }
 0x2c2   :  { %v855_v34 = vadd.f32 %v2498_v28, %v833_v32  ;;  %v2003_v35 = vpop.f32.mrb[10].mxu1 }
 0x2c3   :  { %v860_v36 = vmax.f32 %v856_v33, 0.0  ;;  %v848_v37 = vadd.f32 %v2003_v35, %v2494_v26  ;;  %v842_v39 = vpop.f32.mrb[11].mxu1  ;;  %v63_v35 = vld [vmem:[#allocation2 + $0xe8] sm:$0xff] }
 0x2c4   :  { %v859_v41 = vmax.f32 %v855_v34, 0.0  ;;  %v843_v42 = vadd.f32 %v842_v39, %v2496_v27 }
 0x2c5   :  { %v858_v45 = vadd.f32 %v2498_v28, %v848_v37 }
 0x2c6   :  { %v857_v46 = vadd.f32 %v2498_v28, %v843_v42  ;;  %v2157_v47 = vpack.c.bf16 %v860_v36, %v859_v41  ;;  %v64_v36 = vld [vmem:[#allocation2 + $0xf0] sm:$0xff] }
 0x2c7   :  { %v862_v48 = vmax.f32 %v858_v45, 0.0  ;;  %v2229_v39 = vpack.c.bf16 %v64_v36, %v63_v35 }
 0x2c8   :  { %v861_v49 = vmax.f32 %v857_v46, 0.0  ;;  %2158 = vmatprep.subr.bf16.mxu0 %v2157_v47 }
 0x2c9   :  { %2160 = vmatpush3.bf16.msra.mxu0 %v2157_v47 }
 0x2ca   :  { %v2161_v50 = vpack.c.bf16 %v862_v48, %v861_v49 }
 0x2cc   :  { %2162 = vmatprep.subr.bf16.mxu0 %v2161_v50 }
 0x2cd   :  { %2164 = vmatpush3.bf16.msra.mxu0 %v2161_v50 }
 0x2ce   :  { %2182 = vmatprep.subr.bf16.mxu0 %v2407_v22 }
 0x2d0   :  { %2013 = vmatmul.mubr.msk.f32.vlgmr.msra.gmra.mrb[6].mxu0 %vm129_vm0, %v2508_v51 }
 0x2d1   :  { %2184 = vmatpush3.bf16.msra.mxu0 %v2407_v22  ;;  %v2531_v22 = vld [vmem:[#allocation2 + $0xd0] ss:$0 sm:$0xff] }
 0x2d2   :  { %2186 = vmatprep.subr.bf16.mxu0 %v2411_v25 }
 0x2d5   :  { %2188 = vmatpush3.bf16.msra.mxu0 %v2411_v25 }
 0x3a3   :  { %v2014_v57 = vpop.f32.mrb[6].mxu0 }
 0x3a4   :  { %v967_v58 = vpop.f32.mrb[7].mxu0 }
 0x3a5   :  { %2023 = vmatprep.mubr.msk.f32.mxu1 %vm129_vm0, %v967_v58 }
 0x3a6   :  { %2024 = vmatmul.mubr.msk.f32.vlgmr.msra.gmra.mrb[12].mxu1 %vm129_vm0, %v2014_v57 }
 0x3a7   :  { %2176 = vmatpush3.bf16.msra.mxu1 %v2516_v54  ;;  %2034 = vmatprep.mubr.msk.f32.mxu1 %vm129_vm0, %v2378_v12 }
 0x3a8   :  { %2178 = vmatprep.subr.bf16.mxu1 %v2519_v59 }
 0x3ab   :  { %2180 = vmatpush3.bf16.msra.mxu1 %v2519_v59 }
 0x3ae   :  { %2035 = vmatmul.mubr.msk.f32.vlgmr.msra.gmra.mrb[12].mxu1 %vm129_vm0, %v2393_v16 }
 0x3af   :  { %2066 = vmatprep.mubr.msk.f32.mxu1 %vm129_vm0, %v879_v14 }
 0x481   :  { %v2036_v25 = vpop.f32.mrb[12].mxu1 }
 0x482   :  { %v1137_v60 = vadd.f32 %v2036_v25, %v2531_v22  ;;  %v1123_v61 = vpop.f32.mrb[13].mxu1 }
 0x483   :  { %v1136_v62 = vadd.f32 %v2531_v22, %v1123_v61 }
 0x485   :  { %2259 = vtanh.f32 %v1136_v62 }
 0x486   :  { %2261 = vtanh.f32 %v1137_v60 }
 0x48f   :  { %v2535_v12 = vpop.eup %2259 }
 0x490   :  { %v2537_v63 = vpop.eup %2261  ;;  %2045 = vmatprep.mubr.msk.f32.mxu0 %vm129_vm0, %v2535_v12 }
 0x491   :  { %2046 = vmatmul.mubr.msk.f32.vlgmr.msra.gmra.mrb[8].mxu0 %vm129_vm0, %v2537_v63 }
 0x492   :  { %2052 = vmatprep.mubr.msk.f32.mxu0 %vm286_vm1, %v2418_v38 }
 0x564   :  { %v2047_v16 = vpop.f32.mrb[8].mxu0 }
 0x565   :  { %v1212_v0 = vpop.f32.mrb[9].mxu0 }
 0x566   :  { %v2189_v1 = vpack.c.bf16 %v2047_v16, %v1212_v0 }
 0x568   :  { %2190 = vmatprep.subr.bf16.mxu0 %v2189_v1 }
 0x569   :  { %2192 = vmatpush3.bf16.msra.mxu0 %v2189_v1 }
 0x56a   :  { %2202 = vmatprep.subr.bf16.mxu0 %v2482_v19 }
 0x56c   :  { %2053 = vmatmul.mubr.msk.f32.vlgmr.msra.gmra.mrb[10].mxu0 %vm286_vm1, %v2420_v40 }
 0x56d   :  { %2055 = vmatprep.mubr.msk.f32.mxu0 %vm286_vm1, %v2424_v44  ;;  %2204 = vmatpush3.bf16.msra.mxu0 %v2482_v19 }
 0x56e   :  { %2206 = vmatprep.subr.bf16.mxu0 %v2484_v21 }
 0x570   :  { %2056 = vmatmul.mubr.msk.f32.gmra.mrb[12].mxu0 %vm286_vm1, %v2422_v43 }
 0x571   :  { %2208 = vmatpush3.bf16.msra.mxu0 %v2484_v21  ;;  %v66_v21 = vld [vmem:[#allocation2 + $0x100] sm:$0xff] }
 0x572   :  { %2210 = vmatprep.subr.bf16.mxu0 %v2516_v54 }
 0x63f   :  { %v2054_v38 = vpop.f32.mrb[10].mxu0 }
 0x640   :  { %v1293_v2 = vadd.f32 %v2054_v38, %v2490_v23  ;;  %v1287_v3 = vpop.f32.mrb[11].mxu0  ;;  %v67_v23 = vld [vmem:[#allocation2 + $0x108] sm:$0xff] }
 0x641   :  { %v1288_v40 = vadd.f32 %v1287_v3, %v2492_v24  ;;  %v2217_v24 = vpack.c.bf16 %v66_v21, %v65_v20 }
 0x642   :  { %v1307_v4 = vadd.f32 %v2498_v28, %v1293_v2 }
 0x643   :  { %v1306_v44 = vadd.f32 %v2498_v28, %v1288_v40  ;;  %v2057_v5 = vpop.f32.mrb[12].mxu0 }
 0x644   :  { %v1311_v6 = vmax.f32 %v1307_v4, 0.0  ;;  %v1303_v7 = vadd.f32 %v2057_v5, %v2494_v26  ;;  %v1297_v8 = vpop.f32.mrb[13].mxu0  ;;  %v68_v26 = vld [vmem:[#allocation2 + $0x110] sm:$0xff] }
 0x645   :  { %v1310_v43 = vmax.f32 %v1306_v44, 0.0  ;;  %v1298_v9 = vadd.f32 %v1297_v8, %v2496_v27  ;;  %v2221_v27 = vpack.c.bf16 %v68_v26, %v67_v23 }
 0x646   :  { %v1309_v10 = vadd.f32 %v2498_v28, %v1303_v7 }
 0x647   :  { %v1308_v11 = vadd.f32 %v2498_v28, %v1298_v9  ;;  %v2193_v13 = vpack.c.bf16 %v1311_v6, %v1310_v43  ;;  %v61_v28 = vld [vmem:[#allocation2 + $0xd8] sm:$0xff] }
 0x648   :  { %v1313_v14 = vmax.f32 %v1309_v10, 0.0  ;;  %v2225_v30 = vpack.c.bf16 %v62_v29, %v61_v28 }
 0x649   :  { %v1312_v15 = vmax.f32 %v1308_v11, 0.0  ;;  %2194 = vmatprep.subr.bf16.mxu1 %v2193_v13 }
 0x64a   :  { %2196 = vmatpush3.bf16.msra.mxu1 %v2193_v13 }
 0x64b   :  { %v2197_v17 = vpack.c.bf16 %v1313_v14, %v1312_v15 }
 0x64d   :  { %2198 = vmatprep.subr.bf16.mxu1 %v2197_v17 }
 0x64e   :  { %2200 = vmatpush3.bf16.msra.mxu1 %v2197_v17 }
 0x64f   :  { %2218 = vmatprep.subr.bf16.mxu1 %v2217_v24 }
 0x651   :  { %2067 = vmatmul.mubr.msk.f32.vlgmr.msra.gmra.mrb[14].mxu1 %vm129_vm0, %v2508_v51 }
 0x652   :  { %2220 = vmatpush3.bf16.msra.mxu1 %v2217_v24 }
 0x653   :  { %2222 = vmatprep.subr.bf16.mxu1 %v2221_v27 }
 0x656   :  { %2224 = vmatpush3.bf16.msra.mxu1 %v2221_v27 }
 0x657   :  { %2226 = vmatprep.subr.bf16.mxu1 %v2225_v30 }
 0x724   :  { %v2068_v18 = vpop.f32.mrb[14].mxu1 }
 0x725   :  { %v1380_v19 = vpop.f32.mrb[15].mxu1 }
 0x726   :  { %2077 = vmatprep.mubr.msk.f32.mxu0 %vm129_vm0, %v1380_v19 }
 0x727   :  { %2078 = vmatmul.mubr.msk.f32.vlgmr.msra.gmra.mrb[14].mxu0 %vm129_vm0, %v2068_v18 }
 0x728   :  { %2212 = vmatpush3.bf16.msra.mxu0 %v2516_v54  ;;  %2088 = vmatprep.mubr.msk.f32.mxu0 %vm129_vm0, %v2535_v12 }
 0x729   :  { %2214 = vmatprep.subr.bf16.mxu0 %v2519_v59 }
 0x72c   :  { %2216 = vmatpush3.bf16.msra.mxu0 %v2519_v59 }
 0x72f   :  { %2089 = vmatmul.mubr.msk.f32.vlgmr.msra.gmra.mrb[14].mxu0 %vm129_vm0, %v2537_v63 }
 0x802   :  { %v2090_v31 = vpop.f32.mrb[14].mxu0 }
 0x803   :  { %v1546_v32 = vadd.f32 %v2090_v31, %v2531_v22  ;;  %v1536_v33 = vpop.f32.mrb[15].mxu0 }
 0x804   :  { %v1545_v34 = vadd.f32 %v2531_v22, %v1536_v33 }
 0x806   :  { %2263 = vtanh.f32 %v1545_v34 }
 0x807   :  { %2265 = vtanh.f32 %v1546_v32 }
 0x810   :  { %v2264_v37 = vpop.eup %2263 }
 0x811   :  { %v2266_v41 = vpop.eup %2265  ;;  %2099 = vmatprep.mubr.msk.f32.mxu1 %vm129_vm0, %v2264_v37 }
 0x812   :  { %2100 = vmatmul.mubr.msk.f32.vlgmr.msra.gmra.mrb[16].mxu1 %vm129_vm0, %v2266_v41 }
 0x813   :  { %2228 = vmatpush3.bf16.msra.mxu1 %v2225_v30  ;;  %2110 = vmatprep.mubr.msk.f32.mxu1 %vm129_vm0, %v2535_v12 }
 0x814   :  { %2230 = vmatprep.subr.bf16.mxu1 %v2229_v39 }
 0x817   :  { %2232 = vmatpush3.bf16.msra.mxu1 %v2229_v39 }
 0x81a   :  { %2111 = vmatmul.mubr.msk.f32.vlgmr.msra.gmra.mrb[16].mxu1 %vm129_vm0, %v2537_v63 }
 0x8ed   :  { %v2112_v42 = vpop.f32.mrb[16].mxu1 }
 0x8ee   :  { %v1812_v45 = vmul.f32 -1.442695, %v2112_v42  ;;  %v1696_v46 = vpop.f32.mrb[17].mxu1 }
 0x8ef   :  { %v1811_v47 = vmul.f32 -1.442695, %v1696_v46 }
 0x8f0   :  { %2267 = vpow2.f32 %v1812_v45 }
 0x8f1   :  { %2269 = vpow2.f32 %v1811_v47 }
 0x8fa   :  { %v2268_v48 = vpop.eup %2267 }
 0x8fb   :  { %v2270_v49 = vpop.eup %2269  ;;  %v1712_v50 = vadd.f32 1.0, %v2268_v48 }
 0x8fc   :  { %v1711_v51 = vadd.f32 1.0, %v2270_v49 }
 0x8fd   :  { %2271 = vrcp.f32 %v1712_v50 }
 0x8fe   :  { %2273 = vrcp.f32 %v1711_v51 }
 0x907   :  { %v2272_v52 = vpop.eup %2271 }
 0x908   :  { %v2274_v53 = vpop.eup %2273  ;;  %v1720_v54 = vsub.f32 1.0, %v2272_v52  ;;  %v1718_v56 = vmul.f32 %v2272_v52, %v2266_v41 }
 0x909   :  { %v1719_v55 = vsub.f32 1.0, %v2274_v53  ;;  %v1717_v58 = vmul.f32 %v2274_v53, %v2264_v37 }
 0x90a   :  { %v1722_v57 = vmul.f32 %v2537_v63, %v1720_v54 }
 0x90b   :  { %v1721_v59 = vmul.f32 %v2535_v12, %v1719_v55 }
 0x90c   :  { %v1724_v22 = vadd.f32 %v1722_v57, %v1718_v56 }
 0x90d   :  { %v1723_v25 = vadd.f32 %v1721_v59, %v1717_v58 }
 0x90e   :  { %1726 = vst.msk [vmem:[#allocation5 + $0x8] sm:$0xff] %vm129_vm0, %v1724_v22 }
 0x90f   :  { %1725 = vst.msk [vmem:[#allocation5] sm:$0xff] %vm129_vm0, %v1723_v25 }
 0x910   :  { %2308 = shalt.err (!%p2305_p12)
}
 0x911   :  { %s2309_s11 = scalar_lea.hbm %s2606_s4, 256 }
 0x912   :  { %p2310_p13 = scmp.ne.s32.totalorder %s2606_s4, %s2309_s11  ;;  %p2313_p0 = scmp.lt.u32.totalorder %s2309_s11, %s2606_s4 }
 0x914   :  { %p2315_p1 = pnand %p2313_p0, %p2310_p13 }
 0x916   :  { %2318 = shalt.err (!%p2315_p1)
}
 0x917   :  { %1742 = dma.vmem_to_hbm [thread:$0]  %s1737_s8, 256, %s2606_s4, [#allocation4], %s2324_s28, %s2324_s28, %s2325_s29  }
 0x918   :  { %2321 = dma.done.wait [#allocation4], 256  }
 0x919   :  { %2322 = vsyncadd [#allocation4], 4294967040 }
 0x91a   :  { %1750 = vsyncpa [#allocation3], 1 }
 0x91b   :  { %1751 = vsyncpa [#allocation4], 1 }

</bundles_post_ra>
